<compile_context>
chip_gen: v6e
topology: v6e:2x2x1
jax: 0.10.0
libtpu: 0.0.40
codegen_flags: <defaults>
</compile_context>

<pallas_src>
import jax
import jax.numpy as jnp
from jax.experimental import pallas as pl
from jax.experimental.pallas import tpu as pltpu


def dae_kernel(std_ref, x_ref, z_ref, we_ref, be_ref, wd_ref, bd_ref,
               enc_ref, rec_ref, sse_ref):
    std = std_ref[0]                               # SMEM scalar (precomputed)
    xf = x_ref[...].astype(jnp.float32)            # (tm, D) feature tile
    zf = z_ref[...].astype(jnp.float32)            # (tm, D) unit-normal tile
    noised = xf + zf * (std * jnp.float32(0.05))

    # encode: relu(noised @ W_enc + b_enc); MXU operands in the weight dtype
    # (bf16 fast path by default), f32 accumulation.
    h = jnp.dot(noised.astype(we_ref.dtype), we_ref[...],
                preferred_element_type=jnp.float32)
    h = jnp.maximum(h + be_ref[...], 0.0)

    # reconstruct: h @ W_dec + b_dec
    rec = jnp.dot(h.astype(wd_ref.dtype), wd_ref[...],
                  preferred_element_type=jnp.float32)
    rec = rec + bd_ref[...]

    enc_ref[...] = h.astype(enc_ref.dtype)
    rec_ref[...] = rec.astype(rec_ref.dtype)

    # Per-tile partial SSE (f32, MSE diff kept in f32).  Tiles are fully
    # independent -> the batch grid axis can be "parallel"; the wrapper
    # reduces the partials pairwise.
    diff = rec - xf
    sse_ref[...] = jnp.broadcast_to(jnp.sum(diff * diff), (1, 1, 1))


def _pick_tm(batch, per_row_bytes, resident_bytes, *, granule,
             budget_bytes=12 * 1024 * 1024, cap=512):
    """Largest batch tile that divides `batch`, is a multiple of `granule`,
    stays <= cap, and keeps (double-buffered streamed tiles + resident
    weights) under a conservative VMEM budget (safe on v5e's 16 MiB default
    scoped VMEM without raising vmem_limit_bytes)."""
    if batch % granule != 0:
        return batch                       # single full-batch block (legal)
    best = granule
    tm = granule
    limit = min(batch, cap)
    while tm <= limit:
        if batch % tm == 0 and resident_bytes + 2 * tm * per_row_bytes <= budget_bytes:
            best = tm
        tm += granule
    return best


def dae_forward(features, unit_noise, w_enc, b_enc, w_dec, b_dec, *,
                tm=None, compute_dtype=jnp.bfloat16):
    """features/unit_noise: (B, D_in); w_enc: (D_in, H); w_dec: (H, D_in).

    Weights are pre-transposed (in_features, out_features) so the kernel
    computes y = x @ W + b on the MXU.  `compute_dtype` is the stream /
    weight / output dtype (bf16 default = half HBM traffic + fast MXU path;
    f32 accumulation either way); pass jnp.float32 for exact parity.  In a
    real pipeline pass features/noise already in bf16 to avoid the wrapper
    cast pass.
    """
    B, D_in = features.shape
    H = w_enc.shape[1]
    cdt = jnp.dtype(compute_dtype)
    granule = 8 if cdt.itemsize >= 4 else (16 if cdt.itemsize == 2 else 32)

    # Global std (torch features.std(): unbiased over ALL elements), from a
    # single fused sum / sum-of-squares reduction (one HBM pass of features).
    n = B * D_in
    xf32 = features.astype(jnp.float32)
    s1 = jnp.sum(xf32)
    s2 = jnp.sum(xf32 * xf32)
    var = jnp.maximum((s2 - s1 * s1 / n) / (n - 1), 0.0)
    std_arr = jnp.sqrt(var).reshape((1,)).astype(jnp.float32)

    # Streams / weights in the compute dtype (no-op if already that dtype);
    # biases stay f32 (tiny, added directly to the f32 accumulators).
    x = features.astype(cdt)
    z = unit_noise.astype(cdt)
    we = w_enc.astype(cdt)
    wd = w_dec.astype(cdt)
    be = b_enc.reshape(1, H).astype(jnp.float32)
    bd = b_dec.reshape(1, D_in).astype(jnp.float32)

    if tm is None:
        per_row = (2 * D_in + H + D_in) * cdt.itemsize     # x+z in, enc+rec out
        resident = 2 * D_in * H * cdt.itemsize + (H + D_in) * 4
        tm = _pick_tm(B, per_row, resident, granule=granule)
    assert tm == B or (tm % granule == 0 and B % tm == 0), (
        "batch tile must divide B and be a multiple of the dtype granule")
    num_tiles = B // tm

    enc, rec, sse = pl.pallas_call(
        dae_kernel,
        out_shape=(
            jax.ShapeDtypeStruct((B, H), cdt),
            jax.ShapeDtypeStruct((B, D_in), cdt),
            jax.ShapeDtypeStruct((num_tiles, 1, 1), jnp.float32),
        ),
        grid=(num_tiles,),
        in_specs=[
            pl.BlockSpec(memory_space=pltpu.MemorySpace.SMEM),  # std scalar
            pl.BlockSpec((tm, D_in), lambda i: (i, 0)),         # features tile
            pl.BlockSpec((tm, D_in), lambda i: (i, 0)),         # noise tile
            pl.BlockSpec((D_in, H), lambda i: (0, 0)),          # W_enc (resident)
            pl.BlockSpec((1, H), lambda i: (0, 0)),             # b_enc (resident)
            pl.BlockSpec((H, D_in), lambda i: (0, 0)),          # W_dec (resident)
            pl.BlockSpec((1, D_in), lambda i: (0, 0)),          # b_dec (resident)
        ],
        out_specs=(
            pl.BlockSpec((tm, H), lambda i: (i, 0)),            # encoded tile
            pl.BlockSpec((tm, D_in), lambda i: (i, 0)),         # recon tile
            pl.BlockSpec((1, 1, 1), lambda i: (i, 0, 0)),       # per-tile SSE
        ),
        # No cross-step carry -> batch axis is megacore-shardable on v7x.
        compiler_params=pltpu.CompilerParams(
            dimension_semantics=("parallel",)),
    )(std_arr, x, z, we, be, wd, bd)

    loss = jnp.sum(sse) / float(n)        # pairwise reduce of partial SSEs
    return enc, rec, loss


def init_dae_params(key, input_size, output_size):
    """Deterministic init matching nn.Linear defaults (uniform +/- 1/sqrt(fan_in))."""
    k1, k2, k3, k4 = jax.random.split(key, 4)
    bound_e = 1.0 / (input_size ** 0.5)
    bound_d = 1.0 / (output_size ** 0.5)
    # Stored pre-transposed: (in_features, out_features)
    w_enc = jax.random.uniform(k1, (input_size, output_size), jnp.float32,
                               -bound_e, bound_e)
    b_enc = jax.random.uniform(k2, (1, output_size), jnp.float32,
                               -bound_e, bound_e)
    w_dec = jax.random.uniform(k3, (output_size, input_size), jnp.float32,
                               -bound_d, bound_d)
    b_dec = jax.random.uniform(k4, (1, input_size), jnp.float32,
                               -bound_d, bound_d)
    return w_enc, b_enc, w_dec, b_dec


if __name__ == "__main__":
    key = jax.random.PRNGKey(0)
    k_feat, k_noise, k_param = jax.random.split(key, 3)

    batch = 64
    input_size = 64    # DAE input_size
    output_size = 32   # DAE output_size (hidden / code dim)

    features = jax.random.normal(k_feat, (batch, input_size), jnp.float32)
    # Deterministic stand-in for np.random.normal(0, 1, shape); scaled by
    # features.std() * 0.05 inside the kernel.
    unit_noise = jax.random.normal(k_noise, (batch, input_size), jnp.float32)

    w_enc, b_enc, w_dec, b_dec = init_dae_params(k_param, input_size, output_size)

    # Pure-JAX reference of the forward math (f32, canonical two-pass std).
    n = features.size
    mean = jnp.mean(features)
    std = jnp.sqrt(jnp.sum((features - mean) ** 2) / (n - 1))
    noised = features + unit_noise * std * 0.05
    h_ref = jnp.maximum(noised @ w_enc + b_enc, 0.0)
    rec_ref = h_ref @ w_dec + b_dec
    loss_ref = jnp.mean((rec_ref - features) ** 2)

    # 1) Default fast path: bf16 streams/weights, 4 batch tiles -> exercises
    #    the "parallel" grid and the per-tile partial-loss reduction.
    enc_bf, rec_bf, loss_bf = dae_forward(
        features, unit_noise, w_enc, b_enc, w_dec, b_dec, tm=16)
    jax.block_until_ready((enc_bf, rec_bf, loss_bf))
    assert enc_bf.shape == (batch, output_size)
    assert rec_bf.shape == (batch, input_size)
    assert jnp.allclose(enc_bf.astype(jnp.float32), h_ref, atol=5e-2, rtol=5e-2)
    assert jnp.allclose(rec_bf.astype(jnp.float32), rec_ref, atol=5e-2, rtol=5e-2)
    assert jnp.allclose(loss_bf, loss_ref, atol=5e-2, rtol=5e-2)

    # 2) Exact-parity path: f32 streams/weights, auto batch tile (1 tile here).
    enc_f, rec_f, loss_f = dae_forward(
        features, unit_noise, w_enc, b_enc, w_dec, b_dec,
        compute_dtype=jnp.float32)
    jax.block_until_ready((enc_f, rec_f, loss_f))
    assert jnp.allclose(enc_f, h_ref, atol=1e-5, rtol=1e-5)
    assert jnp.allclose(rec_f, rec_ref, atol=1e-5, rtol=1e-5)
    assert jnp.allclose(loss_f, loss_ref, atol=1e-5, rtol=1e-5)

    print("KERNEL_OK")
</pallas_src>

<mosaic_0001>
module attributes {stable_mosaic.version = 11 : i64} {
  func.func @dae_kernel(%arg0: i32, %arg1: memref<1xf32, #tpu.memory_space<smem>>, %arg2: memref<16x64xbf16, #tpu.memory_space<vmem>>, %arg3: memref<16x64xbf16, #tpu.memory_space<vmem>>, %arg4: memref<64x32xbf16, #tpu.memory_space<vmem>>, %arg5: memref<1x32xf32, #tpu.memory_space<vmem>>, %arg6: memref<32x64xbf16, #tpu.memory_space<vmem>>, %arg7: memref<1x64xf32, #tpu.memory_space<vmem>>, %arg8: memref<16x32xbf16, #tpu.memory_space<vmem>>, %arg9: memref<16x64xbf16, #tpu.memory_space<vmem>>, %arg10: memref<1x1x1xf32, #tpu.memory_space<vmem>>) attributes {dimension_semantics = [#tpu.dimension_semantics<parallel>], iteration_bounds = array<i64: 4>, scalar_prefetch = 0 : i64, scratch_operands = 0 : i64, tpu.core_type = #tpu.core_type<tc>, window_params = [{transform_indices = @transform_0, window_bounds = array<i64: 1>}, {transform_indices = @transform_1, window_bounds = array<i64: 16, 64>}, {transform_indices = @transform_2, window_bounds = array<i64: 16, 64>}, {pipeline_mode = #tpu.pipeline_mode<synchronous>, transform_indices = @transform_3, window_bounds = array<i64: 64, 32>}, {pipeline_mode = #tpu.pipeline_mode<synchronous>, transform_indices = @transform_4, window_bounds = array<i64: 1, 32>}, {pipeline_mode = #tpu.pipeline_mode<synchronous>, transform_indices = @transform_5, window_bounds = array<i64: 32, 64>}, {pipeline_mode = #tpu.pipeline_mode<synchronous>, transform_indices = @transform_6, window_bounds = array<i64: 1, 64>}, {transform_indices = @transform_7, window_bounds = array<i64: 16, 32>}, {transform_indices = @transform_8, window_bounds = array<i64: 16, 64>}, {transform_indices = @transform_9, window_bounds = array<i64: 1, 1, 1>}]} {
    %c0 = arith.constant 0 : index
    %0 = memref.load %arg1[%c0] : memref<1xf32, #tpu.memory_space<smem>>
    %c0_0 = arith.constant 0 : index
    %c0_1 = arith.constant 0 : index
    %1 = vector.load %arg2[%c0_0, %c0_1] : memref<16x64xbf16, #tpu.memory_space<vmem>>, vector<16x64xbf16>
    %2 = arith.extf %1 : vector<16x64xbf16> to vector<16x64xf32>
    %c0_2 = arith.constant 0 : index
    %c0_3 = arith.constant 0 : index
    %3 = vector.load %arg3[%c0_2, %c0_3] : memref<16x64xbf16, #tpu.memory_space<vmem>>, vector<16x64xbf16>
    %4 = arith.extf %3 : vector<16x64xbf16> to vector<16x64xf32>
    %cst = arith.constant 5.000000e-02 : f32
    %5 = arith.mulf %0, %cst : f32
    %6 = vector.broadcast %5 : f32 to vector<16x64xf32>
    %7 = arith.mulf %4, %6 : vector<16x64xf32>
    %8 = arith.addf %2, %7 : vector<16x64xf32>
    %9 = arith.truncf %8 : vector<16x64xf32> to vector<16x64xbf16>
    %c0_4 = arith.constant 0 : index
    %c0_5 = arith.constant 0 : index
    %10 = vector.load %arg4[%c0_4, %c0_5] : memref<64x32xbf16, #tpu.memory_space<vmem>>, vector<64x32xbf16>
    %cst_6 = arith.constant dense<0.000000e+00> : vector<16x32xf32>
    %11 = tpu.matmul %9, %10, %cst_6 {dimension_numbers = #tpu.dot_dimension_numbers<[1], [0], [0], [1], [0, 0, 1, 1], [], []>} : vector<16x64xbf16>, vector<64x32xbf16>, vector<16x32xf32> -> vector<16x32xf32>
    %c0_7 = arith.constant 0 : index
    %c0_8 = arith.constant 0 : index
    %12 = vector.load %arg5[%c0_7, %c0_8] : memref<1x32xf32, #tpu.memory_space<vmem>>, vector<1x32xf32>
    %13 = vector.broadcast %12 : vector<1x32xf32> to vector<16x32xf32>
    %14 = arith.addf %11, %13 : vector<16x32xf32>
    %cst_9 = arith.constant 0.000000e+00 : f32
    %15 = vector.broadcast %cst_9 : f32 to vector<16x32xf32>
    %16 = arith.maximumf %14, %15 : vector<16x32xf32>
    %17 = arith.truncf %16 : vector<16x32xf32> to vector<16x32xbf16>
    %c0_10 = arith.constant 0 : index
    %c0_11 = arith.constant 0 : index
    %18 = vector.load %arg6[%c0_10, %c0_11] : memref<32x64xbf16, #tpu.memory_space<vmem>>, vector<32x64xbf16>
    %cst_12 = arith.constant dense<0.000000e+00> : vector<16x64xf32>
    %19 = tpu.matmul %17, %18, %cst_12 {dimension_numbers = #tpu.dot_dimension_numbers<[1], [0], [0], [1], [0, 0, 1, 1], [], []>} : vector<16x32xbf16>, vector<32x64xbf16>, vector<16x64xf32> -> vector<16x64xf32>
    %c0_13 = arith.constant 0 : index
    %c0_14 = arith.constant 0 : index
    %20 = vector.load %arg7[%c0_13, %c0_14] : memref<1x64xf32, #tpu.memory_space<vmem>>, vector<1x64xf32>
    %21 = vector.broadcast %20 : vector<1x64xf32> to vector<16x64xf32>
    %22 = arith.addf %19, %21 : vector<16x64xf32>
    %23 = arith.truncf %16 : vector<16x32xf32> to vector<16x32xbf16>
    %c0_15 = arith.constant 0 : index
    %c0_16 = arith.constant 0 : index
    %24 = vector.load %arg8[%c0_15, %c0_16] : memref<16x32xbf16, #tpu.memory_space<vmem>>, vector<16x32xbf16>
    tpu.vector_store %arg8[%c0_15, %c0_16], %23 {strides = array<i32>} : memref<16x32xbf16, #tpu.memory_space<vmem>>, vector<16x32xbf16>,
    %25 = arith.truncf %22 : vector<16x64xf32> to vector<16x64xbf16>
    %c0_17 = arith.constant 0 : index
    %c0_18 = arith.constant 0 : index
    %26 = vector.load %arg9[%c0_17, %c0_18] : memref<16x64xbf16, #tpu.memory_space<vmem>>, vector<16x64xbf16>
    tpu.vector_store %arg9[%c0_17, %c0_18], %25 {strides = array<i32>} : memref<16x64xbf16, #tpu.memory_space<vmem>>, vector<16x64xbf16>,
    %27 = arith.subf %22, %2 : vector<16x64xf32>
    %28 = arith.mulf %27, %27 : vector<16x64xf32>
    %29 = vector.shape_cast %28 : vector<16x64xf32> to vector<1x16x64xf32>
    %cst_19 = arith.constant dense<0.000000e+00> : vector<1xf32>
    %30 = vector.multi_reduction <add>, %29, %cst_19 [1, 2] : vector<1x16x64xf32> to vector<1xf32>
    %31 = vector.shape_cast %30 : vector<1xf32> to vector<1x1x1xf32>
    %32 = vector.extract %31[0, 0, 0] : f32 from vector<1x1x1xf32>
    %33 = vector.broadcast %32 : f32 to vector<1x1x1xf32>
    %c0_20 = arith.constant 0 : index
    %c0_21 = arith.constant 0 : index
    %c0_22 = arith.constant 0 : index
    %34 = vector.load %arg10[%c0_20, %c0_21, %c0_22] : memref<1x1x1xf32, #tpu.memory_space<vmem>>, vector<1x1x1xf32>
    tpu.vector_store %arg10[%c0_20, %c0_21, %c0_22], %33 {strides = array<i32>} : memref<1x1x1xf32, #tpu.memory_space<vmem>>, vector<1x1x1xf32>,
    return
  }
  func.func @transform_0(%arg0: i32) -> i32 {
    %c0_i32 = arith.constant 0 : i32
    %c0_i32_0 = arith.constant 0 : i32
    return %c0_i32 : i32
  }
  func.func @transform_1(%arg0: i32) -> (i32, i32) {
    %c0_i32 = arith.constant 0 : i32
    %c0_i32_0 = arith.constant 0 : i32
    return %arg0, %c0_i32 : i32, i32
  }
  func.func @transform_2(%arg0: i32) -> (i32, i32) {
    %c0_i32 = arith.constant 0 : i32
    %c0_i32_0 = arith.constant 0 : i32
    return %arg0, %c0_i32 : i32, i32
  }
  func.func @transform_3(%arg0: i32) -> (i32, i32) {
    %c0_i32 = arith.constant 0 : i32
    %c0_i32_0 = arith.constant 0 : i32
    %c0_i32_1 = arith.constant 0 : i32
    return %c0_i32, %c0_i32_0 : i32, i32
  }
  func.func @transform_4(%arg0: i32) -> (i32, i32) {
    %c0_i32 = arith.constant 0 : i32
    %c0_i32_0 = arith.constant 0 : i32
    %c0_i32_1 = arith.constant 0 : i32
    return %c0_i32, %c0_i32_0 : i32, i32
  }
  func.func @transform_5(%arg0: i32) -> (i32, i32) {
    %c0_i32 = arith.constant 0 : i32
    %c0_i32_0 = arith.constant 0 : i32
    %c0_i32_1 = arith.constant 0 : i32
    return %c0_i32, %c0_i32_0 : i32, i32
  }
  func.func @transform_6(%arg0: i32) -> (i32, i32) {
    %c0_i32 = arith.constant 0 : i32
    %c0_i32_0 = arith.constant 0 : i32
    %c0_i32_1 = arith.constant 0 : i32
    return %c0_i32, %c0_i32_0 : i32, i32
  }
  func.func @transform_7(%arg0: i32) -> (i32, i32) {
    %c0_i32 = arith.constant 0 : i32
    %c0_i32_0 = arith.constant 0 : i32
    return %arg0, %c0_i32 : i32, i32
  }
  func.func @transform_8(%arg0: i32) -> (i32, i32) {
    %c0_i32 = arith.constant 0 : i32
    %c0_i32_0 = arith.constant 0 : i32
    return %arg0, %c0_i32 : i32, i32
  }
  func.func @transform_9(%arg0: i32) -> (i32, i32, i32) {
    %c0_i32 = arith.constant 0 : i32
    %c0_i32_0 = arith.constant 0 : i32
    %c0_i32_1 = arith.constant 0 : i32
    return %arg0, %c0_i32, %c0_i32_0 : i32, i32, i32
  }
}

</mosaic_0001>

<bundles_post_ra>
// kernel: tpu_custom_call.1
= control target key start
LH: loop header
LB: loop body
LE: loop exit
PB: predicated region body
PF: predicated region fallthrough
CT: control target
= control target key end

     0   :  { %s1259_s0 = inlined_call_operand.<no memory space> [shape: f32[1], index: 0, kind: input, shape index: {}]   ;;  %s1260_s1 = inlined_call_operand.vmem [shape: bf16[64,64], index: 1, kind: input, shape index: {}]   ;;  %s1261_s2 = inlined_call_operand.hbm [shape: bf16[64,64], index: 2, kind: input, shape index: {}]   ;;  %s1262_s3 = inlined_call_operand.vmem [shape: bf16[64,32], index: 3, kind: input, shape index: {}]   ;;  %s1263_s4 = inlined_call_operand.vmem [shape: f32[1,32], index: 4, kind: input, shape index: {}]   ;;  %s1264_s5 = inlined_call_operand.vmem [shape: bf16[32,64], index: 5, kind: input, shape index: {}]   ;;  %s1265_s6 = inlined_call_operand.vmem [shape: f32[1,64], index: 6, kind: input, shape index: {}]   ;;  %s1266_s7 = inlined_call_operand.vmem [shape: bf16[64,32], index: 7, kind: output, shape index: {0}]   ;;  %s1267_s8 = inlined_call_operand.hbm [shape: bf16[64,64], index: 8, kind: output, shape index: {1}]   ;;  %s1268_s9 = inlined_call_operand.vmem [shape: f32[4,1,1], index: 9, kind: output, shape index: {2}]  }
   0x1   :  { %15 = sst [smem:[#allocation2]] %s1259_s0 }
   0x2   :  { %16 = vsyncpa [#allocation4], 0 }
   0x3   :  { %18 = vsyncpa [#allocation4 + $0x1], 0 }
   0x4   :  { %19 = vsyncpa [#allocation5], 0 }
   0x5   :  { %21 = vsyncpa [#allocation5 + $0x1], 0  ;;  %s1057_s11 = smov 0   ;;  %s1059_s12 = smov 0  }
   0x6   :  { %s1061_s13 = smov 0   ;;  %s1063_s14 = smov 0  }
   0x7 LB: > { %s1078_s0 = sadd.s32 4294967295, %s994_s14   ;;  %s768_s15 = sadd.s32 4294967294, %s994_s14   ;;  %s994_s14 = sphi %s1063_s14, %s1284_s14   ;;  %s990_s13 = sphi %s1061_s13, %s1283_s13   ;;  %s986_s12 = sphi %s1059_s12, %s1282_s12   ;;  %s982_s11 = sphi %s1057_s11, %s1281_s11  }
   0x8   : > { %s1082_s16 = sadd.s32 1, %s994_s14   ;;  %s81_s17 = sadd.s32 1, %s990_s13 }
   0x9   : > { %s78_s18 = ssub.s32 %s994_s14, %s1082_s16  ;;  %p88_p0 = scmp.ne.s32.totalorder %s990_s13, %s986_s12 }
   0xa   : > { %p79_p1 = scmp.eq.s32.totalorder %s78_s18, 0  ;;  %p89_p2 = scmp.eq.s32.totalorder %s994_s14, 0 }
   0xb   : > { %p94_p3 = scmp.ne.s32.totalorder %s986_s12, %s982_s11  ;;  %p95_p4 = scmp.eq.s32.totalorder %s1078_s0, 0 }
   0xc   : > { %s1094_s19 = scalar_select %p79_p1, %s990_s13, %s81_s17  }
   0xd   : > { %p1096_p5 = por %p89_p2, %p88_p0  ;;  %p1100_p6 = por %p95_p4, %p94_p3 }
   0xe   : > { %1271 = sst [smem:[#allocation9_spill]] %s1094_s19  ;;  %p228_p7 = scmp.eq.s32.totalorder %s1078_s0, 3 }
   0xf   : > { %s1273_s21 = scalar_select %p1100_p6, 1, 0 }
  0x10   : > { %p234_p8 = scmp.eq.s32.totalorder %s768_s15, 3  ;;  %p856_p9 = scmp.lt.s32.totalorder %s994_s14, 4 }
  0x11   : > { %p1106_p10 = por %p228_p7, %p88_p0  ;;  %s304_s24 = sand.u32 1, %s990_s13  }
  0x12   : > { %p1110_p11 = por %p234_p8, %p94_p3  ;;  %s800_s25 = sshll.u32 %s994_s14, 7 }
  0x13   : > { %s1274_s22 = scalar_select %p1106_p10, 1, 0 }
  0x14   : > { %s1275_s23 = scalar_select %p1110_p11, 1, 0 }
  0x15   : > { %s771_s26 = sshll.u32 %s304_s24, 3  ;;  %s1119_s29 = scalar_lea.hbm %s1261_s2, %s800_s25 }
  0x16   : > { %s308_s30 = scalar_lea.vmem [#allocation3], %s771_s26  ;;  %p1123_p12 = pnand %p856_p9, %p1096_p5 }
  0x17   : > { %s315_s10 = sshll.u32 %s308_s30, 4  ;;  %s1129_s17 = scalar_lea.sflag [#allocation4], %s304_s24  ;;  %s1127_s10 = int_to_ptr.vmem [resolvable:$true] %s315_s10 }
  0x18   : > { %s902_s18 = scalar_lea.hbm %s1119_s29, 128  ;;  %p904_p0 = pneg %p1123_p12 }
  0x19   : > { %p903_p13 = scmp.ne.s32.totalorder %s1119_s29, %s902_s18  ;;  %s907_s26 = scalar_lea.hbm %s1261_s2, 512 }
  0x1a   : > { %p908_p3 = scmp.lt.s32.totalorder %s1119_s29, %s1261_s2  ;;  %p909_p4 = scmp.lt.s32.totalorder %s907_s26, %s902_s18 }
  0x1b   : > { %p905_p1 = pnand %p904_p0, %p903_p13 }
  0x1c   : > { %p910_p5 = por %p909_p4, %p908_p3 }
  0x1d   : > { %p906_p2 = pneg %p905_p1 }
  0x1f   : > { %p911_p7 = pnand %p910_p5, %p906_p2 }
  0x21   : > { %914 = shalt.err (!%p911_p7)
}
  0x22   : > { %s915_s24 = scalar_lea.vmem %s1127_s10, 128  ;;  %s996_s30 = smov [#allocation3]  }
  0x23   : > { %p916_p8 = scmp.ne.s32.totalorder %s1127_s10, %s915_s24  ;;  %s920_s19 = sshll.u32 %s996_s30, 4  ;;  %s921_s19 = int_to_ptr.vmem [resolvable:$false] %s920_s19 }
  0x24   : > { %s922_s25 = scalar_lea.vmem %s921_s19, 256  ;;  %p923_p1 = scmp.lt.s32.totalorder %s1127_s10, %s921_s19 }
  0x25   : > { %p918_p9 = pnand %p916_p8, %p904_p0  ;;  %p924_p11 = scmp.lt.s32.totalorder %s922_s25, %s915_s24 }
  0x27   : > { %p919_p13 = pneg %p918_p9  ;;  %p925_p10 = por %p924_p11, %p923_p1 }
  0x29   : > { %p926_p6 = pnand %p925_p10, %p919_p13 }
  0x2b   : > { %929 = shalt.err (!%p926_p6)
}
  0x2c   : > { %s997_s18 = smov 64   ;;  %s998_s27 = smov 4  }
  0x2d   : > { %851 = dma.hbm_to_vmem [thread:$0]  (!%p1123_p12), %s1119_s29, 128, %s1127_s10, %s1129_s17, %s997_s18, %s997_s18, %s998_s27  }
  0x2e   : > { %p774_p0 = scmp.ge.s32.totalorder %s994_s14, 1  ;;  %p323_p2 = scmp.lt.s32.totalorder %s994_s14, 5 }
  0x30   : > { %p324_p3 = pnand %p774_p0, %p323_p2 }
  0x31   : > { %s1153_s19 = sand.u32 (!%p324_p3), 1, %s986_s12   ;;  %p1277_p6 = scmp.ne.s32.totalorder (!%p324_p3), %s1273_s21, 0 }
  0x32   : > { %327 = sbr.rel (%p324_p3) target bundleno = 685 (0x2ad), region = 48  ;;  %s775_s26 = sshll.u32 (!%p324_p3), %s1153_s19, 3 }
  0x33   : > { %s330_s20 = scalar_lea.sflag (!%p324_p3), [#allocation4], %s1153_s19  ;;  %s333_s28 = scalar_lea.vmem (!%p324_p3), [#allocation3], %s775_s26 }
  0x37   : > { %973 = dma.done.wait (%p1277_p6), %s330_s20, 128  }
  0x38   : > { %975 = vsyncadd (%p1277_p6), %s330_s20, 4294967168  ;;  %s777_s29 = sshll.u32 %s1078_s0, 1  ;;  %v999_v0 = vmov 0.0   ;;  %vm1000_vm0 = vmmov 0   ;;  %s399_s10 = sld [smem:[#allocation2]]  ;;  %v896_v1 = vld [vmem:[%s1262_s3 + $0x18] sm:$0xff]  }
  0x39   : > { %822 = vmatprep.subr.bf16.mxu0 %v999_v0  ;;  %830 = vmatprep.mubr.msk.bf16.mxu0 %vm1000_vm0, %v999_v0  ;;  %p382_p10 = scmp.lt.s32.totalorder %s777_s29, 7  ;;  %v897_v2 = vld [vmem:[%s1262_s3 + $0x10] sm:$0xff]   ;;  %v811_v4 = vld [vmem:[%s333_s28] sm:$0xff]   ;;  %vm454_vm1 = vcmask 523264   ;;  %vm577_vm2 = vcmask 257024   ;;  %vm525_vm3 = vcmask 261120  }
  0x3a   : > { %834 = vmatprep.subr.bf16.mxu1 %v999_v0  ;;  %838 = vmatprep.mubr.msk.bf16.mxu1 %vm1000_vm0, %v999_v0  ;;  %v812_v7 = vunpack.c.l.bf16 %v811_v4  ;;  %v813_v8 = vunpack.c.h.bf16 %v811_v4  ;;  %v898_v9 = vld [vmem:[%s1262_s3 + $0x8] sm:$0xff]   ;;  %v899_v15 = vld [vmem:[%s1262_s3] sm:$0xff]   ;;  %vm588_vm4 = vcmask 519168   ;;  %s616_s27 = scalar_lea.sflag [#allocation5], %s1153_s19  ;;  %p1278_p12 = scmp.ne.s32.totalorder %s1274_s22, 0 }
  0x3b   : > { %s1286_s29 = smov (!%p382_p10, %s777_s29), 7  ;;  %823 = vmatpush3.bf16.msra.mxu0 %v896_v1  ;;  %v900_v17 = vld [vmem:[%s1264_s5 + $0x8] sm:$0xff]   ;;  %v901_v18 = vld [vmem:[%s1264_s5] sm:$0xff]   ;;  %s1001_s17 = smov [#allocation6]  }
  0x3c   : > { %s778_s15 = sshll.u32 %s1286_s29, 2  ;;  %824 = vmatprep.subr.bf16.mxu0 %v999_v0  ;;  %835 = vmatpush3.bf16.msra.mxu1 %v900_v17  ;;  %v781_v19 = vld [vmem:[%s1263_s4] ss:$0 sm:$0xff]  ;;  %s375_s29 = scalar_lea.vmem [#allocation6], %s775_s26 }
  0x3d   : > { %s385_s25 = scalar_lea.vmem %s1260_s1, %s778_s15  ;;  %836 = vmatprep.subr.bf16.mxu1 %v999_v0  ;;  %s392_s21 = scalar_lea.vmem %s1266_s7, %s778_s15  ;;  %v787_v31 = vld [vmem:[%s1265_s6] ss:$0 sm:$0xff] }
  0x3e   : > { %v807_v3 = vld [vmem:[%s385_s25] sm:$0xff]   ;;  %s408_s20 = smul.f32 0.05, %s399_s10  ;;  %s805_s15 = sshll.u32 %s1078_s0, 7 }
  0x3f   : > { %v808_v5 = vunpack.c.l.bf16 %v807_v3  ;;  %v809_v6 = vunpack.c.h.bf16 %v807_v3  ;;  %825 = vmatpush3.bf16.msra.mxu0 %v897_v2  ;;  %s636_s10 = sshll.u32 %s375_s29, 4  ;;  %s1210_s18 = scalar_lea.hbm %s1267_s8, %s805_s15  ;;  %s1212_s10 = int_to_ptr.vmem [resolvable:$true] %s636_s10 }
  0x40   : > { %v409_v10 = vstv %s408_s20  ;;  %826 = vmatprep.subr.bf16.mxu0 %v999_v0  ;;  %837 = vmatpush3.bf16.msra.mxu1 %v901_v18  ;;  %s930_s20 = scalar_lea.vmem %s1212_s10, 128  ;;  %s934_s24 = sshll.u32 %s1001_s17, 4  ;;  %s935_s24 = int_to_ptr.vmem [resolvable:$false] %s934_s24 }
  0x41   : > { %v410_v11 = vmul.f32 %v812_v7, %v409_v10  ;;  %v411_v12 = vmul.f32 %v813_v8, %v409_v10  ;;  %p931_p11 = scmp.ne.s32.totalorder %s1212_s10, %s930_s20  ;;  %p937_p7 = scmp.lt.s32.totalorder %s1212_s10, %s935_s24 }
  0x43   : > { %v412_v13 = vadd.f32 %v808_v5, %v410_v11  ;;  %v413_v14 = vadd.f32 %v809_v6, %v411_v12  ;;  %827 = vmatpush3.bf16.msra.mxu0 %v898_v9  ;;  %p932_p4 = pnand %p931_p11, %p1278_p12 }
  0x44   : > { %828 = vmatprep.subr.bf16.mxu0 %v999_v0 }
  0x45   : > { %v414_v16 = vpack.c.bf16 %v413_v14, %v412_v13  ;;  %p933_p5 = pneg %p932_p4 }
  0x47   : > { %829 = vmatpush3.bf16.msra.mxu0 %v899_v15 }
  0x4a   : > { %831 = vmatmul.mubr.msk.bf16.vlgmr.msra.gmra.mxu0 %vm454_vm1, %v414_v16 }
 0x10a   : > { %v492_v20 = vpop.f32.mrf.mxu0 }
 0x10b   : > { %v493_v21 = vadd.f32 %v781_v19, %v492_v20 }
 0x10c   : > { %v832_v22 = vpop.f32.mrf.mxu0 }
 0x10d   : > { %v499_v23 = vmax.f32 %v493_v21, 0.0 }
 0x10e   : > { %v495_v24 = vpop.f32.mrf.mxu0 }
 0x10f   : > { %v801_v25 = vpack.c.bf16 %v499_v23, %v499_v23  ;;  %v496_v26 = vadd.f32 %v781_v19, %v495_v24 }
 0x110   : > { %v833_v27 = vpop.f32.mrf.mxu0 }
 0x111   : > { %578 = vst.msk [vmem:[%s392_s21] sm:$0xf] %vm577_vm2, %v801_v25  ;;  %v500_v28 = vmax.f32 %v496_v26, 0.0 }
 0x113   : > { %v501_v29 = vpack.c.bf16 %v500_v28, %v499_v23  ;;  %v802_v30 = vpack.c.bf16 %v500_v28, %v500_v28 }
 0x115   : > { %579 = vst.msk [vmem:[%s392_s21 + $0x4] sm:$0xf] %vm577_vm2, %v802_v30  ;;  %839 = vmatmul.mubr.msk.bf16.vlgmr.msra.gmra.mxu1 %vm525_vm3, %v501_v29  ;;  %s936_s21 = scalar_lea.vmem %s935_s24, 256 }
 0x116   : > { %p938_p8 = scmp.lt.s32.totalorder %s936_s21, %s930_s20 }
 0x118   : > { %p939_p9 = por %p938_p8, %p937_p7 }
 0x11a   : > { %p940_p13 = pnand %p939_p9, %p933_p5 }
 0x1d5   : > { %v563_v32 = vpop.f32.mrf.mxu1 }
 0x1d6   : > { %v564_v33 = vadd.f32 %v787_v31, %v563_v32 }
 0x1d7   : > { %v840_v34 = vpop.f32.mrf.mxu1 }
 0x1d8   : > { %v803_v35 = vpack.c.bf16 %v564_v33, %v564_v33  ;;  %v591_v36 = vsub.f32 %v564_v33, %v808_v5 }
 0x1d9   : > { %v566_v37 = vpop.f32.mrf.mxu1 }
 0x1da   : > { %589 = vst.msk [vmem:[%s375_s29] sm:$0xf] %vm588_vm4, %v803_v35  ;;  %v567_v38 = vadd.f32 %v787_v31, %v566_v37  ;;  %v593_v42 = vmul.f32 %v591_v36, %v591_v36 }
 0x1db   : > { %v841_v39 = vpop.f32.mrf.mxu1 }
 0x1dc   : > { %v804_v40 = vpack.c.bf16 %v567_v38, %v567_v38  ;;  %v592_v41 = vsub.f32 %v567_v38, %v809_v6  ;;  %v595_v44 = vsel %vm454_vm1, %v593_v42, 0.0 }
 0x1de   : > { %590 = vst.msk [vmem:[%s375_s29 + $0x4] sm:$0xf] %vm588_vm4, %v804_v40  ;;  %v594_v43 = vmul.f32 %v592_v41, %v592_v41 }
 0x1e0   : > { %v596_v45 = vsel %vm454_vm1, %v594_v43, 0.0 }
 0x1e1   : > { %v597_v46 = vadd.f32 %v596_v45, %v595_v44 }
 0x1e3   : > { %598 = vadd.xlane.f32.xlu0 %v597_v46 }
 0x1e4   : > { %943 = shalt.err (!%p940_p13)
}
 0x1e5   : > { %s944_s30 = scalar_lea.hbm %s1210_s18, 128  ;;  %s948_s15 = scalar_lea.hbm %s1267_s8, 512 }
 0x1e6   : > { %p945_p1 = scmp.ne.s32.totalorder %s1210_s18, %s944_s30  ;;  %p949_p3 = scmp.lt.s32.totalorder %s1210_s18, %s1267_s8 }
 0x1e7   : > { %p950_p6 = scmp.lt.s32.totalorder %s948_s15, %s944_s30 }
 0x1e8   : > { %p946_p0 = pnand %p945_p1, %p1278_p12 }
 0x1e9   : > { %p951_p10 = por %p950_p6, %p949_p3 }
 0x1ea   : > { %p947_p2 = pneg %p946_p0 }
 0x1ec   : > { %p952_p11 = pnand %p951_p10, %p947_p2 }
 0x1ee   : > { %955 = shalt.err (!%p952_p11)
}
 0x1ef   : > { %s1002_s20 = smov 64   ;;  %s1003_s17 = smov 4   ;;  %vm608_vm5 = vcmask 0  }
 0x1f0   : > { %846 = dma.vmem_to_hbm [thread:$0]  (%p1278_p12), %s1212_s10, 128, %s1210_s18, %s616_s27, %s1002_s20, %s1002_s20, %s1003_s17  }
 0x1f1   : > { %p395_p4 = scmp.lt.s32.totalorder %s1078_s0, 3 }
 0x1f3   : > { %s1288_s0 = smov (!%p395_p4, %s1078_s0), 3 }
 0x1f4   : > { %s397_s30 = scalar_lea.vmem %s1268_s9, %s1288_s0 }
 0x26c   : > { %v599_v47 = vpop.xlane.xlu0 %598 }
 0x26d   : > { %v600_v48 = vrot.slane %v599_v47, 4 }
 0x26f   : > { %v601_v49 = vadd.f32 %v600_v48, %v599_v47 }
 0x271   : > { %v602_v50 = vrot.slane %v601_v49, 2 }
 0x273   : > { %v603_v51 = vadd.f32 %v602_v50, %v601_v49 }
 0x275   : > { %v604_v52 = vrot.slane %v603_v51, 1 }
 0x277   : > { %v605_v53 = vadd.f32 %v604_v52, %v603_v51 }
 0x279   : > { %842 = vpush %v605_v53 }
 0x2aa   : > { %s843_s28 = spop %842 }
 0x2ab   : > { %v607_v54 = vstv %s843_s28 }
 0x2ac   : > { %609 = vst.msk [vmem:[%s397_s30] sm:$0x1] %vm608_vm5, %v607_v54 }
 0x2ad PF: > { %p857_p12 = scmp.ge.s32.totalorder %s994_s14, 2  ;;  %s662_s22 = sand.u32 1, %s982_s11  }
 0x2ae   : > { %p1279_p5 = scmp.ne.s32.totalorder %s1275_s23, 0  ;;  %s663_s19 = scalar_lea.sflag [#allocation5], %s662_s22 }
 0x2b0   : > { %p853_p7 = pnand %p857_p12, %p1279_p5 }
 0x2b2   : > { %p854_p8 = pneg %p853_p7 }
 0x2b4   : > { %977 = dma.done.wait (%p854_p8), %s663_s19, 128  }
 0x2b5   : > { %979 = vsyncadd (%p854_p8), %s663_s19, 4294967168  ;;  %s1280_s0 = sld [smem:[#allocation9_spill]]  ;;  %p24_p9 = scmp.ge.s32.totalorder %s1082_s16, 6  }
 0x2b6   : > { %s1281_s11 = smov %s986_s12  ;;  %s1282_s12 = smov %s990_s13 }
 0x2b7   : > { %s1284_s14 = smov %s1082_s16  ;;  %26 = sbr.rel (!%p24_p9) target bundleno = 7 (0x7), region = 120 }
 0x2bb   : > { %s1283_s13 = smov %s1280_s0 }
 0x2bc   :  { %674 = vsyncpa [#allocation4], 1 }
 0x2bd   :  { %676 = vsyncpa [#allocation4 + $0x1], 1 }
 0x2be   :  { %677 = vsyncpa [#allocation5], 1 }
 0x2bf   :  { %679 = vsyncpa [#allocation5 + $0x1], 1 }

</bundles_post_ra>
